<compile_context>
chip_gen: v7x
topology: tpu7x:2x2x1
jax: 0.10.0
libtpu: 0.0.40
codegen_flags: <defaults>
</compile_context>

<pallas_src>
import functools

import jax
import jax.numpy as jnp
from jax import lax
from jax.experimental import pallas as pl
from jax.experimental.pallas import tpu as pltpu

_LANE = 128
_SUBLANE = 8


def _round_up(n, m):
    return ((n + m - 1) // m) * m


def _a3c_net_kernel(xT_ref,
                    w1_ref, b1_ref,
                    w2_ref, b2_ref,
                    wh_ref, bh_ref,
                    out_ref, *, a_dim):
    # Feature-major layout: batch on the lane axis for every intermediate.
    xT = xT_ref[...]                                              # (s_dim, tb)

    # fc1 + tanh                                                  (hidden, tb)
    h1 = jnp.tanh(
        jnp.dot(w1_ref[...], xT, preferred_element_type=jnp.float32)
        + b1_ref[...])
    # fc2 + tanh                                                  (hidden, tb)
    h2 = jnp.tanh(
        jnp.dot(w2_ref[...], h1, preferred_element_type=jnp.float32)
        + b2_ref[...])

    # Fused heads: one MXU push -> (out_rows, tb) slab
    #   rows [0, a_dim)      : action logits
    #   row  a_dim           : state value
    #   rows (a_dim, 8)      : zero padding
    fused = (jnp.dot(wh_ref[...], h2, preferred_element_type=jnp.float32)
             + bh_ref[...])

    row = lax.broadcasted_iota(jnp.int32, fused.shape, 0)
    is_action = row < a_dim

    # Masked softmax over the action rows; exp(-inf) = 0 masks padding/value
    # rows for free.  Exact division keeps sum(probs) == 1 to f32 precision.
    masked = jnp.where(is_action, fused, -jnp.inf)
    m = jnp.max(masked, axis=0, keepdims=True)
    e = jnp.exp(masked - m)
    denom = jnp.sum(e, axis=0, keepdims=True)
    probs = e / denom

    out = jnp.where(row == a_dim, fused, probs)
    out_ref[...] = out.astype(out_ref.dtype)


def _reference_forward(x, p):
    """Pure-jnp reference (PyTorch [out, in] weight layout)."""
    h1 = jnp.tanh(x @ p["w1"].T + p["b1"])
    h2 = jnp.tanh(h1 @ p["w2"].T + p["b2"])
    probs = jax.nn.softmax(h2 @ p["wa"].T + p["ba"], axis=-1)
    values = h2 @ p["wv"].T + p["bv"]
    return probs, values


def a3c_net_forward(x, params, *, block_b=1024, min_kernel_batch=256):
    """x: [B, s_dim] float32. Returns (action_probs [B, a_dim], values [B, 1])."""
    B, s_dim = x.shape
    hidden = params["w1"].shape[0]
    a_dim = params["wa"].shape[0]

    # Tiny acting batches: kernel launch + DMA priming dominates; use XLA path.
    if B < min_kernel_batch:
        return _reference_forward(x, params)

    out_rows = _round_up(a_dim + 1, _SUBLANE)

    # Fuse the two heads into one matmul; pad rows to a sublane multiple.
    pad_rows = out_rows - (a_dim + 1)
    w_heads = jnp.pad(jnp.concatenate([params["wa"], params["wv"]], axis=0),
                      ((0, pad_rows), (0, 0)))
    b_heads = jnp.pad(jnp.concatenate([params["ba"], params["bv"]], axis=0),
                      ((0, pad_rows),))[:, None]
    b1 = params["b1"][:, None]
    b2 = params["b2"][:, None]

    # Batch tile: lane axis -> multiple of 128.  Keep >= 2 grid steps when the
    # batch allows it so both v7x TensorCores get work.
    b128 = _round_up(B, _LANE)
    tb = _round_up(min(block_b, b128), _LANE)
    if b128 >= 2 * _LANE and 2 * tb > b128:
        tb = _round_up(b128 // 2, _LANE)
    b_pad = _round_up(B, tb)
    nb = b_pad // tb

    # Feature-major input [s_dim, b_pad]; padded batch columns sliced off later.
    xT = jnp.pad(x.T, ((0, 0), (0, b_pad - B)))

    kernel = functools.partial(_a3c_net_kernel, a_dim=a_dim)
    resident = lambda i: (0, 0)  # weights/biases: same block every grid step

    out = pl.pallas_call(
        kernel,
        out_shape=jax.ShapeDtypeStruct((out_rows, b_pad), jnp.float32),
        grid=(nb,),
        in_specs=[
            pl.BlockSpec((s_dim, tb), lambda i: (0, i)),        # x^T stream
            pl.BlockSpec((hidden, s_dim), resident),             # w1
            pl.BlockSpec((hidden, 1), resident),                  # b1
            pl.BlockSpec((hidden, hidden), resident),              # w2
            pl.BlockSpec((hidden, 1), resident),                  # b2
            pl.BlockSpec((out_rows, hidden), resident),            # fused head W
            pl.BlockSpec((out_rows, 1), resident),                 # fused head b
        ],
        out_specs=pl.BlockSpec((out_rows, tb), lambda i: (0, i)),
        compiler_params=pltpu.CompilerParams(
            dimension_semantics=("parallel",)),                   # batch axis
    )(xT, params["w1"], b1, params["w2"], b2, w_heads, b_heads)

    probs = out[:a_dim, :B].T
    values = out[a_dim:a_dim + 1, :B].T
    return probs, values


def init_params(key, s_dim, a_dim, hidden=64):
    """PyTorch nn.Linear-style init; weights stored [out_features, in_features]."""
    ks = jax.random.split(key, 8)

    def lin(kw, kb, fan_in, fan_out):
        bound = 1.0 / jnp.sqrt(jnp.float32(fan_in))
        w = jax.random.uniform(kw, (fan_out, fan_in), jnp.float32, -bound, bound)
        b = jax.random.uniform(kb, (fan_out,), jnp.float32, -bound, bound)
        return w, b

    w1, b1 = lin(ks[0], ks[1], s_dim, hidden)
    w2, b2 = lin(ks[2], ks[3], hidden, hidden)
    wa, ba = lin(ks[4], ks[5], hidden, a_dim)
    wv, bv = lin(ks[6], ks[7], hidden, 1)
    return dict(w1=w1, b1=b1, w2=w2, b2=b2, wa=wa, ba=ba, wv=wv, bv=bv)


if __name__ == "__main__":
    key = jax.random.PRNGKey(0)
    k_p, k_x1, k_x2, k_x3 = jax.random.split(key, 4)

    s_dim, a_dim = 16, 4
    params = init_params(k_p, s_dim, a_dim)

    def check(probs, values, x, atol):
        ref_probs, ref_values = _reference_forward(x, params)
        assert probs.shape == ref_probs.shape
        assert values.shape == ref_values.shape
        assert jnp.allclose(probs, ref_probs, atol=atol, rtol=atol), \
            float(jnp.max(jnp.abs(probs - ref_probs)))
        assert jnp.allclose(values, ref_values, atol=atol, rtol=atol), \
            float(jnp.max(jnp.abs(values - ref_values)))
        assert jnp.allclose(jnp.sum(probs, axis=-1),
                            jnp.ones((x.shape[0],)), atol=1e-4)

    # --- kernel path, default tiling (tb=256 -> 2 grid steps, both v7x TCs) ---
    B1 = 512
    x1 = jax.random.normal(k_x1, (B1, s_dim), dtype=jnp.float32)
    probs1, values1 = a3c_net_forward(x1, params)
    jax.block_until_ready((probs1, values1))
    check(probs1, values1, x1, atol=2e-3)

    # --- kernel path, ragged batch exercising the grid + lane padding ---
    B2 = 300
    x2 = jax.random.normal(k_x2, (B2, s_dim), dtype=jnp.float32)
    probs2, values2 = a3c_net_forward(x2, params, block_b=128)
    jax.block_until_ready((probs2, values2))
    check(probs2, values2, x2, atol=2e-3)

    # --- tiny acting batch: jnp fallback path ---
    B3 = 8
    x3 = jax.random.normal(k_x3, (B3, s_dim), dtype=jnp.float32)
    probs3, values3 = a3c_net_forward(x3, params)
    jax.block_until_ready((probs3, values3))
    check(probs3, values3, x3, atol=1e-5)

    print("KERNEL_OK")
</pallas_src>

<mosaic_0001>
module attributes {stable_mosaic.version = 11 : i64} {
  func.func @_a3c_net_kernel(%arg0: i32, %arg1: memref<16x256xf32, #tpu.memory_space<vmem>>, %arg2: memref<64x16xf32, #tpu.memory_space<vmem>>, %arg3: memref<64x1xf32, #tpu.memory_space<vmem>>, %arg4: memref<64x64xf32, #tpu.memory_space<vmem>>, %arg5: memref<64x1xf32, #tpu.memory_space<vmem>>, %arg6: memref<8x64xf32, #tpu.memory_space<vmem>>, %arg7: memref<8x1xf32, #tpu.memory_space<vmem>>, %arg8: memref<8x256xf32, #tpu.memory_space<vmem>>) attributes {dimension_semantics = [#tpu.dimension_semantics<parallel>], iteration_bounds = array<i64: 2>, scalar_prefetch = 0 : i64, scratch_operands = 0 : i64, tpu.core_type = #tpu.core_type<tc>, window_params = [{transform_indices = @transform_0, window_bounds = array<i64: 16, 256>}, {pipeline_mode = #tpu.pipeline_mode<synchronous>, transform_indices = @transform_1, window_bounds = array<i64: 64, 16>}, {pipeline_mode = #tpu.pipeline_mode<synchronous>, transform_indices = @transform_2, window_bounds = array<i64: 64, 1>}, {pipeline_mode = #tpu.pipeline_mode<synchronous>, transform_indices = @transform_3, window_bounds = array<i64: 64, 64>}, {pipeline_mode = #tpu.pipeline_mode<synchronous>, transform_indices = @transform_4, window_bounds = array<i64: 64, 1>}, {pipeline_mode = #tpu.pipeline_mode<synchronous>, transform_indices = @transform_5, window_bounds = array<i64: 8, 64>}, {pipeline_mode = #tpu.pipeline_mode<synchronous>, transform_indices = @transform_6, window_bounds = array<i64: 8, 1>}, {transform_indices = @transform_7, window_bounds = array<i64: 8, 256>}]} {
    %c0 = arith.constant 0 : index
    %c0_0 = arith.constant 0 : index
    %0 = vector.load %arg1[%c0, %c0_0] : memref<16x256xf32, #tpu.memory_space<vmem>>, vector<16x256xf32>
    %c0_1 = arith.constant 0 : index
    %c0_2 = arith.constant 0 : index
    %1 = vector.load %arg2[%c0_1, %c0_2] : memref<64x16xf32, #tpu.memory_space<vmem>>, vector<64x16xf32>
    %cst = arith.constant dense<0.000000e+00> : vector<64x256xf32>
    %2 = tpu.matmul %1, %0, %cst {dimension_numbers = #tpu.dot_dimension_numbers<[1], [0], [0], [1], [0, 0, 1, 1], [], []>} : vector<64x16xf32>, vector<16x256xf32>, vector<64x256xf32> -> vector<64x256xf32>
    %c0_3 = arith.constant 0 : index
    %c0_4 = arith.constant 0 : index
    %3 = vector.load %arg3[%c0_3, %c0_4] : memref<64x1xf32, #tpu.memory_space<vmem>>, vector<64x1xf32>
    %4 = vector.broadcast %3 : vector<64x1xf32> to vector<64x256xf32>
    %5 = arith.addf %2, %4 : vector<64x256xf32>
    %6 = math.tanh %5 : vector<64x256xf32>
    %c0_5 = arith.constant 0 : index
    %c0_6 = arith.constant 0 : index
    %7 = vector.load %arg4[%c0_5, %c0_6] : memref<64x64xf32, #tpu.memory_space<vmem>>, vector<64x64xf32>
    %cst_7 = arith.constant dense<0.000000e+00> : vector<64x256xf32>
    %8 = tpu.matmul %7, %6, %cst_7 {dimension_numbers = #tpu.dot_dimension_numbers<[1], [0], [0], [1], [0, 0, 1, 1], [], []>} : vector<64x64xf32>, vector<64x256xf32>, vector<64x256xf32> -> vector<64x256xf32>
    %c0_8 = arith.constant 0 : index
    %c0_9 = arith.constant 0 : index
    %9 = vector.load %arg5[%c0_8, %c0_9] : memref<64x1xf32, #tpu.memory_space<vmem>>, vector<64x1xf32>
    %10 = vector.broadcast %9 : vector<64x1xf32> to vector<64x256xf32>
    %11 = arith.addf %8, %10 : vector<64x256xf32>
    %12 = math.tanh %11 : vector<64x256xf32>
    %c0_10 = arith.constant 0 : index
    %c0_11 = arith.constant 0 : index
    %13 = vector.load %arg6[%c0_10, %c0_11] : memref<8x64xf32, #tpu.memory_space<vmem>>, vector<8x64xf32>
    %cst_12 = arith.constant dense<0.000000e+00> : vector<8x256xf32>
    %14 = tpu.matmul %13, %12, %cst_12 {dimension_numbers = #tpu.dot_dimension_numbers<[1], [0], [0], [1], [0, 0, 1, 1], [], []>} : vector<8x64xf32>, vector<64x256xf32>, vector<8x256xf32> -> vector<8x256xf32>
    %c0_13 = arith.constant 0 : index
    %c0_14 = arith.constant 0 : index
    %15 = vector.load %arg7[%c0_13, %c0_14] : memref<8x1xf32, #tpu.memory_space<vmem>>, vector<8x1xf32>
    %16 = vector.broadcast %15 : vector<8x1xf32> to vector<8x256xf32>
    %17 = arith.addf %14, %16 : vector<8x256xf32>
    %18 = tpu.iota {dimensions = array<i32: 0>} : vector<8x256xi32>
    %c4_i32 = arith.constant 4 : i32
    %19 = vector.broadcast %c4_i32 : i32 to vector<8x256xi32>
    %20 = arith.cmpi slt, %18, %19 : vector<8x256xi32>
    %cst_15 = arith.constant 0xFF800000 : f32
    %21 = vector.broadcast %cst_15 : f32 to vector<8x256xf32>
    %22 = arith.select %20, %17, %21 : vector<8x256xi1>, vector<8x256xf32>
    %cst_16 = arith.constant dense<0xFF800000> : vector<256xf32>
    %23 = vector.multi_reduction <maximumf>, %22, %cst_16 [0] : vector<8x256xf32> to vector<256xf32>
    %24 = vector.shape_cast %23 : vector<256xf32> to vector<1x256xf32>
    %25 = vector.broadcast %24 : vector<1x256xf32> to vector<8x256xf32>
    %26 = arith.subf %22, %25 : vector<8x256xf32>
    %27 = math.exp %26 : vector<8x256xf32>
    %cst_17 = arith.constant dense<0.000000e+00> : vector<256xf32>
    %28 = vector.multi_reduction <add>, %27, %cst_17 [0] : vector<8x256xf32> to vector<256xf32>
    %29 = vector.shape_cast %28 : vector<256xf32> to vector<1x256xf32>
    %30 = vector.broadcast %29 : vector<1x256xf32> to vector<8x256xf32>
    %31 = arith.divf %27, %30 : vector<8x256xf32>
    %c4_i32_18 = arith.constant 4 : i32
    %32 = vector.broadcast %c4_i32_18 : i32 to vector<8x256xi32>
    %33 = arith.cmpi eq, %18, %32 : vector<8x256xi32>
    %34 = arith.select %33, %17, %31 : vector<8x256xi1>, vector<8x256xf32>
    %c0_19 = arith.constant 0 : index
    %c0_20 = arith.constant 0 : index
    %35 = vector.load %arg8[%c0_19, %c0_20] : memref<8x256xf32, #tpu.memory_space<vmem>>, vector<8x256xf32>
    tpu.vector_store %arg8[%c0_19, %c0_20], %34 {strides = array<i32>} : memref<8x256xf32, #tpu.memory_space<vmem>>, vector<8x256xf32>,
    return
  }
  func.func @transform_0(%arg0: i32) -> (i32, i32) {
    %c0_i32 = arith.constant 0 : i32
    %c0_i32_0 = arith.constant 0 : i32
    return %c0_i32, %arg0 : i32, i32
  }
  func.func @transform_1(%arg0: i32) -> (i32, i32) {
    %c0_i32 = arith.constant 0 : i32
    %c0_i32_0 = arith.constant 0 : i32
    %c0_i32_1 = arith.constant 0 : i32
    return %c0_i32, %c0_i32_0 : i32, i32
  }
  func.func @transform_2(%arg0: i32) -> (i32, i32) {
    %c0_i32 = arith.constant 0 : i32
    %c0_i32_0 = arith.constant 0 : i32
    %c0_i32_1 = arith.constant 0 : i32
    return %c0_i32, %c0_i32_0 : i32, i32
  }
  func.func @transform_3(%arg0: i32) -> (i32, i32) {
    %c0_i32 = arith.constant 0 : i32
    %c0_i32_0 = arith.constant 0 : i32
    %c0_i32_1 = arith.constant 0 : i32
    return %c0_i32, %c0_i32_0 : i32, i32
  }
  func.func @transform_4(%arg0: i32) -> (i32, i32) {
    %c0_i32 = arith.constant 0 : i32
    %c0_i32_0 = arith.constant 0 : i32
    %c0_i32_1 = arith.constant 0 : i32
    return %c0_i32, %c0_i32_0 : i32, i32
  }
  func.func @transform_5(%arg0: i32) -> (i32, i32) {
    %c0_i32 = arith.constant 0 : i32
    %c0_i32_0 = arith.constant 0 : i32
    %c0_i32_1 = arith.constant 0 : i32
    return %c0_i32, %c0_i32_0 : i32, i32
  }
  func.func @transform_6(%arg0: i32) -> (i32, i32) {
    %c0_i32 = arith.constant 0 : i32
    %c0_i32_0 = arith.constant 0 : i32
    %c0_i32_1 = arith.constant 0 : i32
    return %c0_i32, %c0_i32_0 : i32, i32
  }
  func.func @transform_7(%arg0: i32) -> (i32, i32) {
    %c0_i32 = arith.constant 0 : i32
    %c0_i32_0 = arith.constant 0 : i32
    return %c0_i32, %arg0 : i32, i32
  }
}

</mosaic_0001>

<bundles_post_ra>
// kernel: tpu_custom_call.1
= control target key start
LH: loop header
LB: loop body
LE: loop exit
PB: predicated region body
PF: predicated region fallthrough
CT: control target
= control target key end

     0   :  { %12 = vsyncpa [#allocation4], 0  ;;  %s1471_s0 = inlined_call_operand.vmem [shape: f32[16,512], index: 0, kind: input, shape index: {}]   ;;  %s1472_s1 = inlined_call_operand.vmem [shape: f32[64,16], index: 1, kind: input, shape index: {}]   ;;  %s1473_s2 = inlined_call_operand.vmem [shape: f32[64,1], index: 2, kind: input, shape index: {}]   ;;  %s1474_s3 = inlined_call_operand.vmem [shape: f32[64,64], index: 3, kind: input, shape index: {}]   ;;  %s1475_s4 = inlined_call_operand.vmem [shape: f32[64,1], index: 4, kind: input, shape index: {}]   ;;  %s1476_s5 = inlined_call_operand.vmem [shape: f32[8,64], index: 5, kind: input, shape index: {}]   ;;  %s1477_s6 = inlined_call_operand.vmem [shape: f32[8,1], index: 6, kind: input, shape index: {}]   ;;  %s1478_s7 = inlined_call_operand.hbm [shape: f32[8,512], index: 7, kind: output, shape index: {}]  }
   0x1   :  { %14 = vsyncpa [#allocation4 + $0x1], 0  ;;  %s1225_s24 = smov 0   ;;  %s1227_s25 = smov 0  }
   0x2   :  { %s1229_s26 = smov 0   ;;  %s1231_s27 = smov 0  }
   0x3 LB: > { %s933_s28 = sadd.s32 4294967295, %s1180_s27   ;;  %s934_s29 = sadd.s32 4294967294, %s1180_s27   ;;  %s1180_s27 = sphi %s1231_s27, %s1484_s27   ;;  %s1176_s26 = sphi %s1229_s26, %s1483_s26   ;;  %s1172_s25 = sphi %s1227_s25, %s1482_s25   ;;  %s1168_s24 = sphi %s1225_s24, %s1481_s24  }
   0x4   : > { %s1248_s30 = sadd.s32 1, %s1180_s27   ;;  %s27_s8 = sadd.s32 1, %s1176_s26 }
   0x5   : > { %s24_s9 = ssub.s32 %s1180_s27, %s1248_s30  ;;  %p34_p0 = scmp.ne.s32.totalorder %s1176_s26, %s1172_s25 }
   0x6   : > { %p25_p1 = scmp.eq.s32.totalorder %s24_s9, 0  ;;  %p35_p2 = scmp.eq.s32.totalorder %s1180_s27, 0 }
   0x7   : > { %p190_p3 = scmp.eq.s32.totalorder %s933_s28, 1  ;;  %p195_p4 = scmp.ne.s32.totalorder %s1172_s25, %s1168_s24 }
   0x8   : > { %s1261_s10 = scalar_select %p25_p1, %s1176_s26, %s27_s8  }
   0x9   : > { %p36_p5 = por %p35_p2, %p34_p0  ;;  %p1263_p6 = por %p190_p3, %p34_p0 }
   0xa   : > { %p196_p7 = scmp.eq.s32.totalorder %s934_s29, 1  ;;  %p936_p9 = scmp.ge.s32.totalorder %s1180_s27, 2 }
   0xc   : > { %p1267_p8 = por %p196_p7, %p195_p4  ;;  %230 = sbr.rel (%p936_p9) target bundleno = 26 (0x1a), region = 40 }
  0x13   : > { %233 = sbr.rel (!%p36_p5) target bundleno = 26 (0x1a), region = 44  ;;  %s235_s13 = sand.u32 (%p36_p5), 1, %s1176_s26  }
  0x14   : > { %s965_s14 = sshll.u32 (%p36_p5), %s1180_s27, 4  ;;  %s937_s15 = sshll.u32 (%p36_p5), %s235_s13, 5 }
  0x15   : > { %s240_s18 = scalar_lea.vmem (%p36_p5), %s1471_s0, %s965_s14  ;;  %s237_s19 = scalar_lea.vmem (%p36_p5), [#allocation2], %s937_s15 }
  0x16   : > { %v253_v0 = vld [vmem:[%s240_s18] sm:$0xff] (%p36_p5)  ;;  %v255_v1 = vld [vmem:[%s240_s18 + $0x8] sm:$0xff] (%p36_p5) }
  0x17   : > { %v257_v2 = vld [vmem:[%s240_s18 + $0x20] sm:$0xff] (%p36_p5)  ;;  %254 = vst [vmem:[%s237_s19] sm:$0xff] (%p36_p5), %v253_v0  ;;  %256 = vst [vmem:[%s237_s19 + $0x8] sm:$0xff] (%p36_p5), %v255_v1  ;;  %v259_v3 = vld [vmem:[%s240_s18 + $0x28] sm:$0xff] (%p36_p5) }
  0x18   : > { %258 = vst [vmem:[%s237_s19 + $0x10] sm:$0xff] (%p36_p5), %v257_v2  ;;  %260 = vst [vmem:[%s237_s19 + $0x18] sm:$0xff] (%p36_p5), %v259_v3 }
  0x1a PF: > { %p940_p10 = scmp.ge.s32.totalorder %s1180_s27, 1  ;;  %p265_p11 = scmp.lt.s32.totalorder %s1180_s27, 3 }
  0x1c   : > { %p266_p12 = pnand %p940_p10, %p265_p11 }
  0x1d   : > { %s1282_s20 = sand.u32 (!%p266_p12), 1, %s1172_s25   ;;  %v1182_v4 = vmov (!%p266_p12), 0.0   ;;  %v1183_v5 = vmov (!%p266_p12), 0   ;;  %v317_v6 = vld [vmem:[%s1473_s2] sm:$0xff] (!%p266_p12)  ;;  %v318_v12 = vld [vmem:[%s1473_s2 + $0x8] sm:$0xff] (!%p266_p12)  ;;  %v319_v13 = vld [vmem:[%s1473_s2 + $0x10] sm:$0xff] (!%p266_p12) }
  0x1e   : > { %269 = sbr.rel (%p266_p12) target bundleno = 842 (0x34a), region = 67  ;;  %s941_s21 = sshll.u32 (!%p266_p12), %s1282_s20, 5  ;;  %454 = vmatprep.mubr.f32.mxu0 (!%p266_p12), %v1182_v4  ;;  %664 = vmatprep.mubr.f32.mxu1 (!%p266_p12), %v1182_v4  ;;  %v320_v15 = vld [vmem:[%s1473_s2 + $0x18] sm:$0xff] (!%p266_p12)  ;;  %v309_v16 = vld [vmem:[%s1472_s1] sm:$0xff] (!%p266_p12)  ;;  %vm365_vm0 = vcmask (!%p266_p12), 130048   ;;  %v322_v18 = vld [vmem:[%s1473_s2 + $0x28] sm:$0xff] (!%p266_p12) }
  0x1f   : > { %1044 = vset.pattern.permute.xlu0 (!%p266_p12), %v1183_v5  ;;  %1045 = vset.pattern.permute.xlu1 (!%p266_p12), %v1183_v5  ;;  %s274_s29 = scalar_lea.vmem (!%p266_p12), [#allocation2], %s941_s21  ;;  %v321_v17 = vld [vmem:[%s1473_s2 + $0x20] sm:$0xff] (!%p266_p12)  ;;  %v310_v19 = vld [vmem:[%s1472_s1 + $0x8] sm:$0xff] (!%p266_p12)  ;;  %v323_v20 = vld [vmem:[%s1473_s2 + $0x30] sm:$0xff] (!%p266_p12)  ;;  %vm575_vm1 = vcmask (!%p266_p12), 523264   ;;  %s942_s9 = sshll.u32 (!%p266_p12), %s1282_s20, 4 }
  0x20   : > { %v306_v7 = vld [vmem:[%s274_s29 + $0x8] sm:$0xff] (!%p266_p12)  ;;  %v308_v8 = vld [vmem:[%s274_s29 + $0x18] sm:$0xff] (!%p266_p12)  ;;  %v305_v9 = vld [vmem:[%s274_s29] sm:$0xff] (!%p266_p12)  ;;  %327 = vperm.xlu0 (!%p266_p12), %1044, %v317_v6   ;;  %337 = vperm.xlu1 (!%p266_p12), %1045, %v319_v13   ;;  %s966_s13 = sshll.u32 (!%p266_p12), %s933_s28, 8  ;;  %s302_s14 = scalar_lea.vmem (!%p266_p12), [#allocation3], %s942_s9 }
  0x21   : > { %v967_v10 = vpack.c.bf16 (!%p266_p12), %v308_v8, %v306_v7  ;;  %v307_v11 = vld [vmem:[%s274_s29 + $0x10] sm:$0xff] (!%p266_p12)  ;;  %v324_v21 = vld [vmem:[%s1473_s2 + $0x38] sm:$0xff] (!%p266_p12)  ;;  %v527_v23 = vld [vmem:[%s1475_s4] sm:$0xff] (!%p266_p12)  ;;  %s869_s15 = sshll.u32 (!%p266_p12), %s302_s14, 4  ;;  %s1427_s18 = scalar_lea.hbm (!%p266_p12), %s1478_s7, %s966_s13  ;;  %s1429_s15 = int_to_ptr.vmem [resolvable:$true] %s869_s15 }
  0x22   : > { %v969_v14 = vpack.c.bf16 (!%p266_p12), %v307_v11, %v305_v9  ;;  %v311_v22 = vld [vmem:[%s1472_s1 + $0x10] sm:$0xff] (!%p266_p12)  ;;  %v528_v24 = vld [vmem:[%s1475_s4 + $0x8] sm:$0xff] (!%p266_p12)  ;;  %v312_v25 = vld [vmem:[%s1472_s1 + $0x18] sm:$0xff] (!%p266_p12)  ;;  %s855_s28 = scalar_lea.sflag (!%p266_p12), [#allocation4], %s1282_s20  ;;  %s1118_s19 = scalar_lea.vmem (!%p266_p12), %s1429_s15, 256 }
  0x23   : > { %968 = vmatprep.subr.bf16.mxu0 (!%p266_p12), %v967_v10  ;;  %v529_v26 = vld [vmem:[%s1475_s4 + $0x10] sm:$0xff] (!%p266_p12)  ;;  %v530_v27 = vld [vmem:[%s1475_s4 + $0x18] sm:$0xff] (!%p266_p12)  ;;  %v313_v28 = vld [vmem:[%s1472_s1 + $0x20] sm:$0xff] (!%p266_p12)  ;;  %p1119_p13 = scmp.ne.s32.totalorder (!%p266_p12), %s1429_s15, %s1118_s19  ;;  %s1184_s21 = smov (!%p266_p12), [#allocation3]  }
  0x24   : > { %970 = vmatpush1.bf16.msra.mxu0 (!%p266_p12), %v969_v14  ;;  %332 = vperm.xlu0 (!%p266_p12), %1044, %v318_v12   ;;  %v531_v29 = vld [vmem:[%s1475_s4 + $0x20] sm:$0xff] (!%p266_p12)  ;;  %v532_v30 = vld [vmem:[%s1475_s4 + $0x28] sm:$0xff] (!%p266_p12)  ;;  %v533_v32 = vld [vmem:[%s1475_s4 + $0x30] sm:$0xff] (!%p266_p12)  ;;  %s1122_s22 = sshll.u32 (!%p266_p12), %s1184_s21, 4  ;;  %s1123_s22 = int_to_ptr.vmem [resolvable:$false] %s1122_s22 }
  0x25   : > { %342 = vperm.xlu1 %1045, %v320_v15   ;;  %v314_v31 = vld [vmem:[%s1472_s1 + $0x28] sm:$0xff]  ;;  %v534_v33 = vld [vmem:[%s1475_s4 + $0x38] sm:$0xff]  ;;  %v315_v34 = vld [vmem:[%s1472_s1 + $0x30] sm:$0xff]  ;;  %p1120_p0 = pnand %p1119_p13, %p1263_p6  ;;  %s1124_s23 = scalar_lea.vmem %s1123_s22, 512 }
  0x26   : > { %v730_v35 = vld [vmem:[%s1477_s6] sm:$0xff]  ;;  %v316_v36 = vld [vmem:[%s1472_s1 + $0x38] sm:$0xff]  ;;  %p1125_p2 = scmp.lt.s32.totalorder %s1429_s15, %s1123_s22  ;;  %p1126_p3 = scmp.lt.s32.totalorder %s1124_s23, %s1118_s19 }
  0x27   : > { %943 = vmatmul.mubr.msk.f32.vlgmr.msra.gmra.mrb[0].mxu0 %vm365_vm0, %v309_v16  ;;  %p1121_p1 = pneg %p1120_p0 }
  0x28   : > { %460 = vmatprep.mubr.f32.mxu0 %v1182_v4  ;;  %347 = vperm.xlu0 %1044, %v321_v17   ;;  %p1127_p4 = por %p1126_p3, %p1125_p2 }
  0x29   : > { %352 = vperm.xlu1 %1045, %v322_v18  }
  0x2a   : > { %p1128_p5 = pnand %p1127_p4, %p1121_p1 }
  0x2b   : > { %944 = vmatmul.mubr.msk.f32.gmra.mrb[2].mxu0 %vm365_vm0, %v310_v19 }
  0x2c   : > { %466 = vmatprep.mubr.f32.mxu0 %v1182_v4  ;;  %357 = vperm.xlu0 %1044, %v323_v20  }
  0x2d   : > { %362 = vperm.xlu1 %1045, %v324_v21  }
  0x2f   : > { %945 = vmatmul.mubr.msk.f32.gmra.mrb[4].mxu0 %vm365_vm0, %v311_v22 }
  0x30   : > { %472 = vmatprep.mubr.f32.mxu0 %v1182_v4  ;;  %537 = vperm.xlu0 %1044, %v527_v23  }
  0x31   : > { %542 = vperm.xlu1 %1045, %v528_v24  }
  0x33   : > { %946 = vmatmul.mubr.msk.f32.gmra.mrb[6].mxu0 %vm365_vm0, %v312_v25 }
  0x34   : > { %478 = vmatprep.mubr.f32.mxu0 %v1182_v4  ;;  %547 = vperm.xlu0 %1044, %v529_v26  }
  0x35   : > { %552 = vperm.xlu1 %1045, %v530_v27  }
  0x37   : > { %947 = vmatmul.mubr.msk.f32.gmra.mrb[8].mxu0 %vm365_vm0, %v313_v28 }
  0x38   : > { %484 = vmatprep.mubr.f32.mxu0 %v1182_v4  ;;  %557 = vperm.xlu0 %1044, %v531_v29  }
  0x39   : > { %562 = vperm.xlu1 %1045, %v532_v30  }
  0x3b   : > { %948 = vmatmul.mubr.msk.f32.gmra.mrb[10].mxu0 %vm365_vm0, %v314_v31 }
  0x3c   : > { %490 = vmatprep.mubr.f32.mxu0 %v1182_v4  ;;  %567 = vperm.xlu0 %1044, %v533_v32  }
  0x3d   : > { %572 = vperm.xlu1 %1045, %v534_v33  }
  0x3f   : > { %949 = vmatmul.mubr.msk.f32.gmra.mrb[12].mxu0 %vm365_vm0, %v315_v34 }
  0x40   : > { %496 = vmatprep.mubr.f32.mxu0 %v1182_v4  ;;  %733 = vperm.xlu0 %1044, %v730_v35  }
  0x43   : > { %950 = vmatmul.mubr.msk.f32.gmra.mrb[14].mxu0 %vm365_vm0, %v316_v36 }
  0x44   : > { %803 = vmatprep.mubr.f32.mxu0 %v1182_v4 }
  0x9f   : > { %v328_v37 = vpop.permute.xlu0 %327  ;;  %v338_v46 = vpop.permute.xlu1 %337 }
  0xa3   : > { %v333_v42 = vpop.permute.xlu0 %332 }
  0xa4   : > { %v343_v52 = vpop.permute.xlu1 %342 }
  0xa7   : > { %v348_v59 = vpop.permute.xlu0 %347 }
  0xa8   : > { %v353_v5 = vpop.permute.xlu1 %352 }
  0xab   : > { %v358_v12 = vpop.permute.xlu0 %357 }
  0xac   : > { %v363_v21 = vpop.permute.xlu1 %362 }
  0xfa   : > { %v456_v38 = vpop.f32.mrb[0].mxu0 }
  0xfb   : > { %v457_v39 = vadd.f32 %v456_v38, %v328_v37  ;;  %v458_v40 = vpop.f32.mrb[1].mxu0  ;;  %v519_v38 = vld [vmem:[%s1474_s3] sm:$0xff] }
  0xfc   : > { %v459_v41 = vadd.f32 %v458_v40, %v328_v37  ;;  %v521_v40 = vld [vmem:[%s1474_s3 + $0x10] sm:$0xff] }
  0xfd   : > { %1046 = vtanh.f32 %v457_v39  ;;  %v520_v39 = vld [vmem:[%s1474_s3 + $0x8] sm:$0xff] }
  0xfe   : > { %v462_v43 = vpop.f32.mrb[2].mxu0  ;;  %1048 = vtanh.f32 %v459_v41  ;;  %v522_v41 = vld [vmem:[%s1474_s3 + $0x18] sm:$0xff] }
  0xff   : > { %v463_v44 = vadd.f32 %v462_v43, %v333_v42  ;;  %v464_v45 = vpop.f32.mrb[3].mxu0  ;;  %v524_v43 = vld [vmem:[%s1474_s3 + $0x28] sm:$0xff] }
 0x100   : > { %v465_v47 = vadd.f32 %v464_v45, %v333_v42  ;;  %v523_v42 = vld [vmem:[%s1474_s3 + $0x20] sm:$0xff]  ;;  %v526_v45 = vld [vmem:[%s1474_s3 + $0x38] sm:$0xff] }
 0x101   : > { %1050 = vtanh.f32 %v463_v44  ;;  %v525_v44 = vld [vmem:[%s1474_s3 + $0x30] sm:$0xff] }
 0x102   : > { %1052 = vtanh.f32 %v465_v47  ;;  %v468_v48 = vpop.f32.mrb[4].mxu0 }
 0x103   : > { %v469_v49 = vadd.f32 %v468_v48, %v338_v46  ;;  %v470_v50 = vpop.f32.mrb[5].mxu0 }
 0x104   : > { %v471_v51 = vadd.f32 %v470_v50, %v338_v46  ;;  %v538_v46 = vpop.permute.xlu0 %537 }
 0x105   : > { %1054 = vtanh.f32 %v469_v49 }
 0x106   : > { %v474_v53 = vpop.f32.mrb[6].mxu0  ;;  %1056 = vtanh.f32 %v471_v51  ;;  %v543_v51 = vpop.permute.xlu1 %542 }
 0x107   : > { %v475_v54 = vadd.f32 %v474_v53, %v343_v52  ;;  %v476_v55 = vpop.f32.mrb[7].mxu0  ;;  %v1047_v57 = vpop.eup %1046 }
 0x108   : > { %v477_v56 = vadd.f32 %v476_v55, %v343_v52  ;;  %v1049_v58 = vpop.eup %1048 }
 0x109   : > { %1058 = vtanh.f32 %v475_v54 }
 0x10a   : > { %1060 = vtanh.f32 %v477_v56  ;;  %v480_v60 = vpop.f32.mrb[8].mxu0 }
 0x10b   : > { %v1051_v61 = vpop.eup %1050  ;;  %v481_v62 = vadd.f32 %v480_v60, %v348_v59  ;;  %v482_v63 = vpop.f32.mrb[9].mxu0 }
 0x10c   : > { %v1053_v0 = vpop.eup %1052  ;;  %v483_v1 = vadd.f32 %v482_v63, %v348_v59  ;;  %v973_v2 = vpack.c.bf16 %v1051_v61, %v1047_v57  ;;  %v553_v60 = vpop.permute.xlu1 %552 }
 0x10d   : > { %v971_v3 = vpack.c.bf16 %v1053_v0, %v1049_v58  ;;  %1062 = vtanh.f32 %v481_v62 }
 0x10e   : > { %v486_v6 = vpop.f32.mrb[10].mxu0  ;;  %1064 = vtanh.f32 %v483_v1 }
 0x10f   : > { %v487_v7 = vadd.f32 %v486_v6, %v353_v5  ;;  %v488_v8 = vpop.f32.mrb[11].mxu0  ;;  %972 = vmatprep.subr.bf16.mxu1 %v971_v3  ;;  %v1055_v10 = vpop.eup %1054 }
 0x110   : > { %v489_v9 = vadd.f32 %v488_v8, %v353_v5  ;;  %974 = vmatpush1.bf16.msra.mxu1 %v973_v2  ;;  %v1057_v11 = vpop.eup %1056 }
 0x111   : > { %1066 = vtanh.f32 %v487_v7 }
 0x112   : > { %1068 = vtanh.f32 %v489_v9  ;;  %v492_v13 = vpop.f32.mrb[12].mxu0 }
 0x113   : > { %v1059_v14 = vpop.eup %1058  ;;  %v493_v15 = vadd.f32 %v492_v13, %v358_v12  ;;  %v494_v16 = vpop.f32.mrb[13].mxu0 }
 0x114   : > { %v1061_v17 = vpop.eup %1060  ;;  %v495_v18 = vadd.f32 %v494_v16, %v358_v12  ;;  %v977_v19 = vpack.c.bf16 %v1059_v14, %v1055_v10  ;;  %v563_v13 = vpop.permute.xlu1 %562 }
 0x115   : > { %v975_v20 = vpack.c.bf16 %v1061_v17, %v1057_v11  ;;  %1070 = vtanh.f32 %v493_v15 }
 0x116   : > { %v498_v22 = vpop.f32.mrb[14].mxu0  ;;  %1072 = vtanh.f32 %v495_v18 }
 0x117   : > { %v499_v23 = vadd.f32 %v498_v22, %v363_v21  ;;  %v500_v24 = vpop.f32.mrb[15].mxu0  ;;  %976 = vmatprep.subr.bf16.mxu1 %v975_v20  ;;  %v1063_v26 = vpop.eup %1062 }
 0x118   : > { %v501_v25 = vadd.f32 %v500_v24, %v363_v21  ;;  %978 = vmatpush1.bf16.msra.mxu1 %v977_v19  ;;  %v1065_v27 = vpop.eup %1064 }
 0x119   : > { %1074 = vtanh.f32 %v499_v23 }
 0x11a   : > { %1076 = vtanh.f32 %v501_v25 }
 0x11b   : > { %v1067_v28 = vpop.eup %1066 }
 0x11c   : > { %v1069_v29 = vpop.eup %1068  ;;  %v981_v30 = vpack.c.bf16 %v1067_v28, %v1063_v26 }
 0x11d   : > { %v979_v31 = vpack.c.bf16 %v1069_v29, %v1065_v27  ;;  %v573_v29 = vpop.permute.xlu1 %572 }
 0x11f   : > { %980 = vmatprep.subr.bf16.mxu1 %v979_v31  ;;  %v1071_v32 = vpop.eup %1070 }
 0x120   : > { %982 = vmatpush1.bf16.msra.mxu1 %v981_v30  ;;  %v1073_v33 = vpop.eup %1072 }
 0x123   : > { %v1075_v34 = vpop.eup %1074 }
 0x124   : > { %v1077_v35 = vpop.eup %1076  ;;  %v985_v36 = vpack.c.bf16 %v1075_v34, %v1071_v32 }
 0x125   : > { %v983_v37 = vpack.c.bf16 %v1077_v35, %v1073_v33 }
 0x127   : > { %984 = vmatprep.subr.bf16.mxu1 %v983_v37 }
 0x128   : > { %986 = vmatpush1.bf16.msra.mxu1 %v985_v36 }
 0x12b   : > { %951 = vmatmul.mubr.msk.f32.vlgmr.msra.gmra.mrb[0].mxu1 %vm575_vm1, %v519_v38 }
 0x12c   : > { %670 = vmatprep.mubr.f32.mxu1 %v1182_v4 }
 0x12f   : > { %952 = vmatmul.mubr.msk.f32.gmra.mrb[2].mxu1 %vm575_vm1, %v520_v39 }
 0x130   : > { %676 = vmatprep.mubr.f32.mxu1 %v1182_v4 }
 0x133   : > { %953 = vmatmul.mubr.msk.f32.gmra.mrb[4].mxu1 %vm575_vm1, %v521_v40 }
 0x134   : > { %682 = vmatprep.mubr.f32.mxu1 %v1182_v4 }
 0x137   : > { %954 = vmatmul.mubr.msk.f32.gmra.mrb[6].mxu1 %vm575_vm1, %v522_v41 }
 0x138   : > { %688 = vmatprep.mubr.f32.mxu1 %v1182_v4 }
 0x13b   : > { %955 = vmatmul.mubr.msk.f32.gmra.mrb[8].mxu1 %vm575_vm1, %v523_v42 }
 0x13c   : > { %694 = vmatprep.mubr.f32.mxu1 %v1182_v4 }
 0x13f   : > { %956 = vmatmul.mubr.msk.f32.gmra.mrb[10].mxu1 %vm575_vm1, %v524_v43 }
 0x140   : > { %700 = vmatprep.mubr.f32.mxu1 %v1182_v4 }
 0x143   : > { %957 = vmatmul.mubr.msk.f32.gmra.mrb[12].mxu1 %vm575_vm1, %v525_v44 }
 0x144   : > { %706 = vmatprep.mubr.f32.mxu1 %v1182_v4  ;;  %v548_v4 = vpop.permute.xlu0 %547 }
 0x147   : > { %958 = vmatmul.mubr.msk.f32.gmra.mrb[14].mxu1 %vm575_vm1, %v526_v45 }
 0x148   : > { %v558_v3 = vpop.permute.xlu0 %557 }
 0x14c   : > { %v568_v20 = vpop.permute.xlu0 %567 }
 0x1fe   : > { %v666_v47 = vpop.f32.mrb[0].mxu1 }
 0x1ff   : > { %v667_v48 = vadd.f32 %v666_v47, %v538_v46  ;;  %v668_v49 = vpop.f32.mrb[1].mxu1  ;;  %v810_v47 = vlaneseq }
 0x200   : > { %v669_v50 = vadd.f32 %v668_v49, %v538_v46  ;;  %v729_v46 = vld [vmem:[%s1476_s5] sm:$0xff]  ;;  %v734_v49 = vpop.permute.xlu0 %733 }
 0x201   : > { %1078 = vtanh.f32 %v667_v48  ;;  %v811_v48 = vshrl.u32 %v810_v47, 7 }
 0x202   : > { %v672_v52 = vpop.f32.mrb[2].mxu1  ;;  %1080 = vtanh.f32 %v669_v50 }
 0x203   : > { %v673_v53 = vadd.f32 %v672_v52, %v543_v51  ;;  %v674_v54 = vpop.f32.mrb[3].mxu1  ;;  %vm812_vm2 = vcmp.lt.s32.totalorder %v811_v48, 4  ;;  %vm849_vm3 = vcmp.eq.s32.totalorder %v811_v48, 4 }
 0x204   : > { %v675_v55 = vadd.f32 %v674_v54, %v543_v51 }
 0x205   : > { %1082 = vtanh.f32 %v673_v53 }
 0x206   : > { %1084 = vtanh.f32 %v675_v55  ;;  %v678_v56 = vpop.f32.mrb[4].mxu1 }
 0x207   : > { %v679_v57 = vadd.f32 %v678_v56, %v548_v4  ;;  %v680_v58 = vpop.f32.mrb[5].mxu1 }
 0x208   : > { %v681_v59 = vadd.f32 %v680_v58, %v548_v4 }
 0x209   : > { %1086 = vtanh.f32 %v679_v57 }
 0x20a   : > { %v684_v61 = vpop.f32.mrb[6].mxu1  ;;  %1088 = vtanh.f32 %v681_v59 }
 0x20b   : > { %v685_v62 = vadd.f32 %v684_v61, %v553_v60  ;;  %v686_v63 = vpop.f32.mrb[7].mxu1  ;;  %v1079_v1 = vpop.eup %1078 }
 0x20c   : > { %v687_v0 = vadd.f32 %v686_v63, %v553_v60  ;;  %v1081_v2 = vpop.eup %1080 }
 0x20d   : > { %1090 = vtanh.f32 %v685_v62 }
 0x20e   : > { %1092 = vtanh.f32 %v687_v0  ;;  %v690_v5 = vpop.f32.mrb[8].mxu1 }
 0x20f   : > { %v1083_v6 = vpop.eup %1082  ;;  %v691_v7 = vadd.f32 %v690_v5, %v558_v3  ;;  %v692_v8 = vpop.f32.mrb[9].mxu1 }
 0x210   : > { %v1085_v9 = vpop.eup %1084  ;;  %v693_v10 = vadd.f32 %v692_v8, %v558_v3  ;;  %v989_v11 = vpack.c.bf16 %v1083_v6, %v1079_v1 }
 0x211   : > { %v987_v12 = vpack.c.bf16 %v1085_v9, %v1081_v2  ;;  %1094 = vtanh.f32 %v691_v7 }
 0x212   : > { %v696_v14 = vpop.f32.mrb[10].mxu1  ;;  %1096 = vtanh.f32 %v693_v10 }
 0x213   : > { %v697_v15 = vadd.f32 %v696_v14, %v563_v13  ;;  %v698_v16 = vpop.f32.mrb[11].mxu1  ;;  %988 = vmatprep.subr.bf16.mxu0 %v987_v12  ;;  %v1087_v18 = vpop.eup %1086 }
 0x214   : > { %v699_v17 = vadd.f32 %v698_v16, %v563_v13  ;;  %990 = vmatpush1.bf16.msra.mxu0 %v989_v11  ;;  %v1089_v19 = vpop.eup %1088 }
 0x215   : > { %1098 = vtanh.f32 %v697_v15 }
 0x216   : > { %1100 = vtanh.f32 %v699_v17  ;;  %v702_v21 = vpop.f32.mrb[12].mxu1 }
 0x217   : > { %v1091_v22 = vpop.eup %1090  ;;  %v703_v23 = vadd.f32 %v702_v21, %v568_v20  ;;  %v704_v24 = vpop.f32.mrb[13].mxu1 }
 0x218   : > { %v1093_v25 = vpop.eup %1092  ;;  %v705_v26 = vadd.f32 %v704_v24, %v568_v20  ;;  %v993_v27 = vpack.c.bf16 %v1091_v22, %v1087_v18 }
 0x219   : > { %v991_v28 = vpack.c.bf16 %v1093_v25, %v1089_v19  ;;  %1102 = vtanh.f32 %v703_v23 }
 0x21a   : > { %v708_v30 = vpop.f32.mrb[14].mxu1  ;;  %1104 = vtanh.f32 %v705_v26 }
 0x21b   : > { %v709_v31 = vadd.f32 %v708_v30, %v573_v29  ;;  %v710_v32 = vpop.f32.mrb[15].mxu1  ;;  %992 = vmatprep.subr.bf16.mxu0 %v991_v28  ;;  %v1095_v34 = vpop.eup %1094 }
 0x21c   : > { %v711_v33 = vadd.f32 %v710_v32, %v573_v29  ;;  %994 = vmatpush1.bf16.msra.mxu0 %v993_v27  ;;  %v1097_v35 = vpop.eup %1096 }
 0x21d   : > { %1106 = vtanh.f32 %v709_v31 }
 0x21e   : > { %1108 = vtanh.f32 %v711_v33 }
 0x21f   : > { %v1099_v36 = vpop.eup %1098 }
 0x220   : > { %v1101_v37 = vpop.eup %1100  ;;  %v997_v38 = vpack.c.bf16 %v1099_v36, %v1095_v34 }
 0x221   : > { %v995_v39 = vpack.c.bf16 %v1101_v37, %v1097_v35 }
 0x223   : > { %996 = vmatprep.subr.bf16.mxu0 %v995_v39  ;;  %v1103_v40 = vpop.eup %1102 }
 0x224   : > { %998 = vmatpush1.bf16.msra.mxu0 %v997_v38  ;;  %v1105_v41 = vpop.eup %1104 }
 0x227   : > { %v1107_v42 = vpop.eup %1106 }
 0x228   : > { %v1109_v43 = vpop.eup %1108  ;;  %v1001_v44 = vpack.c.bf16 %v1107_v42, %v1103_v40 }
 0x229   : > { %v999_v45 = vpack.c.bf16 %v1109_v43, %v1105_v41 }
 0x22b   : > { %1000 = vmatprep.subr.bf16.mxu0 %v999_v45 }
 0x22c   : > { %1002 = vmatpush1.bf16.msra.mxu0 %v1001_v44 }
 0x22f   : > { %959 = vmatmul.mubr.msk.f32.vlgmr.msra.gmra.mrb[16].mxu0 %vm575_vm1, %v729_v46 }
 0x302   : > { %v805_v50 = vpop.f32.mrb[16].mxu0 }
 0x303   : > { %v806_v51 = vadd.f32 %v805_v50, %v734_v49  ;;  %v807_v52 = vpop.f32.mrb[17].mxu0 }
 0x304   : > { %v808_v53 = vadd.f32 %v807_v52, %v734_v49 }
 0x305   : > { %v813_v54 = vsel %vm812_vm2, %v806_v51, -inf }
 0x306   : > { %v815_v55 = vrot.slane %v813_v54, 4  ;;  %v814_v4 = vsel %vm812_vm2, %v808_v53, -inf }
 0x307   : > { %v821_v56 = vrot.slane %v814_v4, 4 }
 0x308   : > { %v816_v57 = vmax.f32 %v813_v54, %v815_v55 }
 0x309   : > { %v822_v58 = vmax.f32 %v814_v4, %v821_v56 }
 0x30a   : > { %v817_v59 = vrot.slane %v816_v57, 2 }
 0x30b   : > { %v823_v60 = vrot.slane %v822_v58, 2 }
 0x30c   : > { %v818_v61 = vmax.f32 %v816_v57, %v817_v59 }
 0x30d   : > { %v824_v62 = vmax.f32 %v822_v58, %v823_v60 }
 0x30e   : > { %v819_v63 = vrot.slane %v818_v61, 1 }
 0x30f   : > { %v825_v0 = vrot.slane %v824_v62, 1 }
 0x310   : > { %v820_v1 = vmax.f32 %v818_v61, %v819_v63 }
 0x311   : > { %v826_v2 = vmax.f32 %v824_v62, %v825_v0 }
 0x312   : > { %v827_v3 = vsub.f32 %v813_v54, %v820_v1 }
 0x313   : > { %v828_v5 = vsub.f32 %v814_v4, %v826_v2 }
 0x314   : > { %v829_v6 = vmul.f32 1.442695, %v827_v3 }
 0x315   : > { %v831_v7 = vmul.f32 1.442695, %v828_v5 }
 0x316   : > { %1110 = vpow2.f32 %v829_v6 }
 0x317   : > { %1112 = vpow2.f32 %v831_v7 }
 0x320   : > { %v1111_v8 = vpop.eup %1110 }
 0x321   : > { %v1113_v9 = vpop.eup %1112  ;;  %v833_v10 = vrot.slane %v1111_v8, 4 }
 0x322   : > { %v839_v11 = vrot.slane %v1113_v9, 4 }
 0x323   : > { %v834_v12 = vadd.f32 %v1111_v8, %v833_v10 }
 0x324   : > { %v840_v13 = vadd.f32 %v1113_v9, %v839_v11 }
 0x325   : > { %v835_v14 = vrot.slane %v834_v12, 2 }
 0x326   : > { %v841_v15 = vrot.slane %v840_v13, 2 }
 0x327   : > { %v836_v16 = vadd.f32 %v835_v14, %v834_v12 }
 0x328   : > { %v842_v17 = vadd.f32 %v841_v15, %v840_v13 }
 0x329   : > { %v837_v18 = vrot.slane %v836_v16, 1 }
 0x32a   : > { %v843_v19 = vrot.slane %v842_v17, 1 }
 0x32b   : > { %v838_v20 = vadd.f32 %v837_v18, %v836_v16 }
 0x32c   : > { %v844_v21 = vadd.f32 %v843_v19, %v842_v17 }
 0x32d   : > { %1114 = vrcp.f32 %v838_v20 }
 0x32e   : > { %1116 = vrcp.f32 %v844_v21 }
 0x337   : > { %v1115_v22 = vpop.eup %1114 }
 0x338   : > { %v1117_v23 = vpop.eup %1116  ;;  %v846_v24 = vmul.f32 %v1115_v22, %v1111_v8 }
 0x339   : > { %v848_v25 = vmul.f32 %v1117_v23, %v1113_v9 }
 0x33a   : > { %v850_v26 = vsel %vm849_vm3, %v806_v51, %v846_v24 }
 0x33b   : > { %v851_v27 = vsel %vm849_vm3, %v808_v53, %v848_v25  ;;  %852 = vst [vmem:[%s302_s14] sm:$0xff] %v850_v26 }
 0x33c   : > { %853 = vst [vmem:[%s302_s14 + $0x8] sm:$0xff] %v851_v27 }
 0x33d   : > { %1131 = shalt.err (!%p1128_p5)
}
 0x33e   : > { %s1132_s20 = scalar_lea.hbm %s1427_s18, 256  ;;  %s1136_s9 = scalar_lea.hbm %s1478_s7, 512 }
 0x33f   : > { %p1133_p7 = scmp.ne.s32.totalorder %s1427_s18, %s1132_s20  ;;  %p1137_p12 = scmp.lt.u32.totalorder %s1427_s18, %s1478_s7 }
 0x340   : > { %p1138_p13 = scmp.lt.u32.totalorder %s1136_s9, %s1132_s20  ;;  %p1140_p1 = scmp.lt.u32.totalorder %s1132_s20, %s1427_s18 }
 0x341   : > { %p1134_p10 = pnand %p1133_p7, %p1263_p6 }
 0x342   : > { %p1139_p0 = por %p1138_p13, %p1137_p12 }
 0x343   : > { %p1135_p11 = pneg %p1134_p10 }
 0x344   : > { %p1141_p2 = por %p1140_p1, %p1139_p0 }
 0x346   : > { %p1142_p3 = pnand %p1141_p2, %p1135_p11 }
 0x348   : > { %1145 = shalt.err (!%p1142_p3)
}
 0x349   : > { %1003 = dma.vmem_to_hbm [thread:$0]  (%p1263_p6), %s1429_s15, 256, %s1427_s18, %s855_s28  }
 0x34a PF: > { %s881_s16 = sand.u32 1, %s1168_s24   ;;  %p1006_p4 = pnand %p936_p9, %p1267_p8 }
 0x34b   : > { %s882_s17 = scalar_lea.sflag [#allocation4], %s881_s16 }
 0x34c   : > { %1163 = dma.done.wait (!%p1006_p4), %s882_s17, 256  }
 0x34d   : > { %1165 = vsyncadd (!%p1006_p4), %s882_s17, 4294967040  ;;  %p17_p5 = scmp.ge.s32.totalorder %s1248_s30, 4   ;;  %s1481_s24 = smov %s1172_s25 }
 0x34e   : > { %s1482_s25 = smov %s1176_s26  ;;  %s1483_s26 = smov %s1261_s10 }
 0x34f   : > { %s1484_s27 = smov %s1248_s30  ;;  %19 = sbr.rel (!%p17_p5) target bundleno = 3 (0x3), region = 111 }
 0x356   :  { %887 = vsyncpa [#allocation4], 1 }
 0x357   :  { %889 = vsyncpa [#allocation4 + $0x1], 1 }

</bundles_post_ra>
